<compile_context>
chip_gen: v5e
topology: v5e:2x2
jax: 0.10.0
libtpu: 0.0.40
codegen_flags: <defaults>
</compile_context>

<pallas_src>
import functools

import jax
import jax.numpy as jnp
from jax.experimental import pallas as pl
from jax.experimental.pallas import tpu as pltpu

_LANE = 128
_ROW_ALIGN = 16          # sublane granularity covering bf16 packing and f32 tiles
_NEG_BIG = -1e30         # "minus infinity" for padded class lanes (finite -> NaN-free)


def _round_up(n, m):
    return ((n + m - 1) // m) * m


def _choose_tiling(B, max_tb):
    """Return (B_pad, tb) with tb | B_pad, tb % 16 == 0, minimal zero padding.

    For batches that fit in <= 2*max_tb rows we split into two tiles so the
    'parallel' grid axis can occupy both TensorCores on v7x (no-op on v5e/v6e).
    """
    B_pad = _round_up(B, _ROW_ALIGN)
    if B_pad <= _ROW_ALIGN:
        return B_pad, B_pad                      # one tiny tile (e.g. B=8 -> 16)
    if B_pad <= 2 * max_tb:
        tb = _round_up(pl.cdiv(B_pad, 2), _ROW_ALIGN)
        return 2 * tb, tb                        # exactly 2 grid steps
    tb = max_tb
    return _round_up(B_pad, tb), tb              # many large tiles


def _mlp_kernel(x_ref,
                w1_ref, b1_ref,
                w2_ref, b2_ref,
                w3_ref, b3_ref,
                w4_ref, b4_ref,
                w5_ref, b5_ref,
                out_ref):
    # x arrives f32 with its natural feature width; cast to bf16 in-kernel.
    h = x_ref[...].astype(jnp.bfloat16)

    # fc1..fc4: bf16 MXU matmul (f32 accumulation), bias+ReLU in f32, then
    # materialize the inter-layer activation in bf16.
    h = jnp.dot(h, w1_ref[...], preferred_element_type=jnp.float32)
    h = jnp.maximum(h + b1_ref[...], 0.0).astype(jnp.bfloat16)

    h = jnp.dot(h, w2_ref[...], preferred_element_type=jnp.float32)
    h = jnp.maximum(h + b2_ref[...], 0.0).astype(jnp.bfloat16)

    h = jnp.dot(h, w3_ref[...], preferred_element_type=jnp.float32)
    h = jnp.maximum(h + b3_ref[...], 0.0).astype(jnp.bfloat16)

    h = jnp.dot(h, w4_ref[...], preferred_element_type=jnp.float32)
    h = jnp.maximum(h + b4_ref[...], 0.0).astype(jnp.bfloat16)

    # fc5: Linear (no activation).  Padded class lanes carry -1e30 via b5, so
    # no explicit masking is needed before the softmax max/exp.
    logits = jnp.dot(h, w5_ref[...], preferred_element_type=jnp.float32)
    logits = logits + b5_ref[...]

    # Numerically stable log_softmax over dim=1 (f32 epilogue).
    m = jnp.max(logits, axis=1, keepdims=True)
    shifted = logits - m
    s = jnp.sum(jnp.exp(shifted), axis=1, keepdims=True)
    out_ref[...] = (shifted - jnp.log(s)).astype(out_ref.dtype)


@functools.partial(jax.jit, static_argnames=("max_tb", "out_dtype"))
def custom_rna_model_forward(x, params, max_tb=512, out_dtype=jnp.float32):
    """x: (B, feature_size) float32.  params: dict of (W, b) per layer, W=(in, out)."""
    B, F = x.shape
    num_classes = params["w5"].shape[1]
    C_pad = _round_up(num_classes, _LANE)

    B_pad, tb = _choose_tiling(B, max_tb)

    # ---- wrapper-side prep (weights only; x is passed through un-padded in F) ----
    x_p = jnp.pad(x, ((0, B_pad - B), (0, 0)))          # f32, natural F last dim
    w1 = params["w1"].astype(jnp.bfloat16)
    w2 = params["w2"].astype(jnp.bfloat16)
    w3 = params["w3"].astype(jnp.bfloat16)
    w4 = params["w4"].astype(jnp.bfloat16)
    w5 = jnp.pad(params["w5"],
                 ((0, 0), (0, C_pad - num_classes))).astype(jnp.bfloat16)
    b1 = params["b1"].astype(jnp.float32)
    b2 = params["b2"].astype(jnp.float32)
    b3 = params["b3"].astype(jnp.float32)
    b4 = params["b4"].astype(jnp.float32)
    # Padded class lanes get -1e30 so they vanish under max/exp in the kernel.
    b5 = jnp.pad(params["b5"].astype(jnp.float32),
                 ((0, 0), (0, C_pad - num_classes)),
                 constant_values=_NEG_BIG)

    operands = (x_p, w1, b1, w2, b2, w3, b3, w4, b4, w5, b5)

    # Batch-tiled x/out; weights & biases pinned VMEM-resident (constant index map).
    x_spec = pl.BlockSpec((tb, F), lambda i: (i, 0))
    out_spec = pl.BlockSpec((tb, C_pad), lambda i: (i, 0))

    def _resident(arr):
        return pl.BlockSpec(arr.shape, lambda i: (0, 0))

    in_specs = [x_spec] + [_resident(a) for a in operands[1:]]

    h1, h2, h3, h4 = 128, 256, 128, 64
    flops = 2 * B_pad * (F * h1 + h1 * h2 + h2 * h3 + h3 * h4 + h4 * C_pad)
    transcendentals = B_pad * (C_pad + 1)          # exp per class lane + log per row
    out_bytes = jnp.dtype(out_dtype).itemsize
    bytes_accessed = (
        B_pad * F * 4                                            # x (f32 in)
        + (F * h1 + h1 * h2 + h2 * h3 + h3 * h4 + h4 * C_pad) * 2  # bf16 weights
        + (h1 + h2 + h3 + h4 + C_pad) * 4                        # f32 biases
        + B_pad * C_pad * out_bytes                              # output
    )

    out_padded = pl.pallas_call(
        _mlp_kernel,
        out_shape=jax.ShapeDtypeStruct((B_pad, C_pad), out_dtype),
        grid=(B_pad // tb,),
        in_specs=in_specs,
        out_specs=out_spec,
        compiler_params=pltpu.CompilerParams(
            dimension_semantics=("parallel",)),
        cost_estimate=pl.CostEstimate(
            flops=flops,
            transcendentals=transcendentals,
            bytes_accessed=bytes_accessed),
    )(*operands)

    # Padded batch rows / class lanes are garbage-by-design; slice them off here.
    return out_padded[:B, :num_classes]


def init_params(key, feature_size, num_classes):
    """Deterministic synthetic parameters (PyTorch nn.Linear init, W stored (in, out))."""
    sizes = [(feature_size, 128), (128, 256), (256, 128), (128, 64),
             (64, num_classes)]
    params = {}
    for i, (fan_in, fan_out) in enumerate(sizes, start=1):
        key, kw, kb = jax.random.split(key, 3)
        bound = 1.0 / (fan_in ** 0.5)
        params[f"w{i}"] = jax.random.uniform(
            kw, (fan_in, fan_out), jnp.float32, -bound, bound)
        params[f"b{i}"] = jax.random.uniform(
            kb, (1, fan_out), jnp.float32, -bound, bound)
    return params


def reference_forward_f32(x, params):
    """Pure-JAX f32 reference of the PyTorch forward."""
    h = x
    for i in range(1, 5):
        h = jnp.maximum(h @ params[f"w{i}"] + params[f"b{i}"], 0.0)
    logits = h @ params["w5"] + params["b5"]
    return jax.nn.log_softmax(logits, axis=1)


def reference_forward_bf16(x, params):
    """Pure-JAX reference matching the kernel's bf16-matmul / f32-accumulate numerics."""
    h = x.astype(jnp.bfloat16)
    for i in range(1, 5):
        h = jnp.dot(h, params[f"w{i}"].astype(jnp.bfloat16),
                    preferred_element_type=jnp.float32)
        h = jnp.maximum(h + params[f"b{i}"], 0.0).astype(jnp.bfloat16)
    logits = jnp.dot(h, params["w5"].astype(jnp.bfloat16),
                     preferred_element_type=jnp.float32) + params["b5"]
    return jax.nn.log_softmax(logits, axis=1)


if __name__ == "__main__":
    feature_size = 32
    num_classes = 10
    batch = 8

    key = jax.random.PRNGKey(0)
    key, kx = jax.random.split(key)
    x = jax.random.normal(kx, (batch, feature_size), jnp.float32)
    params = init_params(key, feature_size, num_classes)

    out = custom_rna_model_forward(x, params)
    out = jax.block_until_ready(out)
    assert out.shape == (batch, num_classes)

    # Tight check vs. a reference with matching bf16-matmul numerics.
    ref_bf16 = reference_forward_bf16(x, params)
    assert jnp.allclose(out, ref_bf16, atol=1e-3, rtol=1e-3), \
        "mismatch vs bf16-matmul reference"

    # Loose check vs. the full-f32 PyTorch-equivalent forward (bf16 rounding only).
    ref_f32 = reference_forward_f32(x, params)
    assert jnp.allclose(out, ref_f32, atol=1e-1), "mismatch vs f32 reference"

    # Exercise a larger batch (2 grid steps, both v7x TCs) for shape/tiling coverage.
    key, kx2 = jax.random.split(key)
    x2 = jax.random.normal(kx2, (300, feature_size), jnp.float32)
    out2 = jax.block_until_ready(custom_rna_model_forward(x2, params))
    assert out2.shape == (300, num_classes)
    assert jnp.allclose(out2, reference_forward_bf16(x2, params),
                        atol=1e-3, rtol=1e-3), "mismatch on large batch"

    print("KERNEL_OK")
</pallas_src>

<mosaic_0001>
module attributes {stable_mosaic.version = 11 : i64} {
  func.func @_mlp_kernel(%arg0: i32, %arg1: memref<16x32xf32, #tpu.memory_space<vmem>>, %arg2: memref<32x128xbf16, #tpu.memory_space<vmem>>, %arg3: memref<1x128xf32, #tpu.memory_space<vmem>>, %arg4: memref<128x256xbf16, #tpu.memory_space<vmem>>, %arg5: memref<1x256xf32, #tpu.memory_space<vmem>>, %arg6: memref<256x128xbf16, #tpu.memory_space<vmem>>, %arg7: memref<1x128xf32, #tpu.memory_space<vmem>>, %arg8: memref<128x64xbf16, #tpu.memory_space<vmem>>, %arg9: memref<1x64xf32, #tpu.memory_space<vmem>>, %arg10: memref<64x128xbf16, #tpu.memory_space<vmem>>, %arg11: memref<1x128xf32, #tpu.memory_space<vmem>>, %arg12: memref<16x128xf32, #tpu.memory_space<vmem>>) attributes {dimension_semantics = [#tpu.dimension_semantics<parallel>], iteration_bounds = array<i64: 1>, scalar_prefetch = 0 : i64, scratch_operands = 0 : i64, tpu.core_type = #tpu.core_type<tc>, window_params = [{transform_indices = @transform_0, window_bounds = array<i64: 16, 32>}, {pipeline_mode = #tpu.pipeline_mode<synchronous>, transform_indices = @transform_1, window_bounds = array<i64: 32, 128>}, {pipeline_mode = #tpu.pipeline_mode<synchronous>, transform_indices = @transform_2, window_bounds = array<i64: 1, 128>}, {pipeline_mode = #tpu.pipeline_mode<synchronous>, transform_indices = @transform_3, window_bounds = array<i64: 128, 256>}, {pipeline_mode = #tpu.pipeline_mode<synchronous>, transform_indices = @transform_4, window_bounds = array<i64: 1, 256>}, {pipeline_mode = #tpu.pipeline_mode<synchronous>, transform_indices = @transform_5, window_bounds = array<i64: 256, 128>}, {pipeline_mode = #tpu.pipeline_mode<synchronous>, transform_indices = @transform_6, window_bounds = array<i64: 1, 128>}, {pipeline_mode = #tpu.pipeline_mode<synchronous>, transform_indices = @transform_7, window_bounds = array<i64: 128, 64>}, {pipeline_mode = #tpu.pipeline_mode<synchronous>, transform_indices = @transform_8, window_bounds = array<i64: 1, 64>}, {pipeline_mode = #tpu.pipeline_mode<synchronous>, transform_indices = @transform_9, window_bounds = array<i64: 64, 128>}, {pipeline_mode = #tpu.pipeline_mode<synchronous>, transform_indices = @transform_10, window_bounds = array<i64: 1, 128>}, {transform_indices = @transform_11, window_bounds = array<i64: 16, 128>}]} {
    %c0 = arith.constant 0 : index
    %c0_0 = arith.constant 0 : index
    %0 = vector.load %arg1[%c0, %c0_0] : memref<16x32xf32, #tpu.memory_space<vmem>>, vector<16x32xf32>
    %1 = arith.truncf %0 : vector<16x32xf32> to vector<16x32xbf16>
    %c0_1 = arith.constant 0 : index
    %c0_2 = arith.constant 0 : index
    %2 = vector.load %arg2[%c0_1, %c0_2] : memref<32x128xbf16, #tpu.memory_space<vmem>>, vector<32x128xbf16>
    %cst = arith.constant dense<0.000000e+00> : vector<16x128xf32>
    %3 = tpu.matmul %1, %2, %cst {dimension_numbers = #tpu.dot_dimension_numbers<[1], [0], [0], [1], [0, 0, 1, 1], [], []>} : vector<16x32xbf16>, vector<32x128xbf16>, vector<16x128xf32> -> vector<16x128xf32>
    %c0_3 = arith.constant 0 : index
    %c0_4 = arith.constant 0 : index
    %4 = vector.load %arg3[%c0_3, %c0_4] : memref<1x128xf32, #tpu.memory_space<vmem>>, vector<1x128xf32>
    %5 = vector.broadcast %4 : vector<1x128xf32> to vector<16x128xf32>
    %6 = arith.addf %3, %5 : vector<16x128xf32>
    %cst_5 = arith.constant 0.000000e+00 : f32
    %7 = vector.broadcast %cst_5 : f32 to vector<16x128xf32>
    %8 = arith.maximumf %6, %7 : vector<16x128xf32>
    %9 = arith.truncf %8 : vector<16x128xf32> to vector<16x128xbf16>
    %c0_6 = arith.constant 0 : index
    %c0_7 = arith.constant 0 : index
    %10 = vector.load %arg4[%c0_6, %c0_7] : memref<128x256xbf16, #tpu.memory_space<vmem>>, vector<128x256xbf16>
    %cst_8 = arith.constant dense<0.000000e+00> : vector<16x256xf32>
    %11 = tpu.matmul %9, %10, %cst_8 {dimension_numbers = #tpu.dot_dimension_numbers<[1], [0], [0], [1], [0, 0, 1, 1], [], []>} : vector<16x128xbf16>, vector<128x256xbf16>, vector<16x256xf32> -> vector<16x256xf32>
    %c0_9 = arith.constant 0 : index
    %c0_10 = arith.constant 0 : index
    %12 = vector.load %arg5[%c0_9, %c0_10] : memref<1x256xf32, #tpu.memory_space<vmem>>, vector<1x256xf32>
    %13 = vector.broadcast %12 : vector<1x256xf32> to vector<16x256xf32>
    %14 = arith.addf %11, %13 : vector<16x256xf32>
    %cst_11 = arith.constant 0.000000e+00 : f32
    %15 = vector.broadcast %cst_11 : f32 to vector<16x256xf32>
    %16 = arith.maximumf %14, %15 : vector<16x256xf32>
    %17 = arith.truncf %16 : vector<16x256xf32> to vector<16x256xbf16>
    %c0_12 = arith.constant 0 : index
    %c0_13 = arith.constant 0 : index
    %18 = vector.load %arg6[%c0_12, %c0_13] : memref<256x128xbf16, #tpu.memory_space<vmem>>, vector<256x128xbf16>
    %cst_14 = arith.constant dense<0.000000e+00> : vector<16x128xf32>
    %19 = tpu.matmul %17, %18, %cst_14 {dimension_numbers = #tpu.dot_dimension_numbers<[1], [0], [0], [1], [0, 0, 1, 1], [], []>} : vector<16x256xbf16>, vector<256x128xbf16>, vector<16x128xf32> -> vector<16x128xf32>
    %c0_15 = arith.constant 0 : index
    %c0_16 = arith.constant 0 : index
    %20 = vector.load %arg7[%c0_15, %c0_16] : memref<1x128xf32, #tpu.memory_space<vmem>>, vector<1x128xf32>
    %21 = vector.broadcast %20 : vector<1x128xf32> to vector<16x128xf32>
    %22 = arith.addf %19, %21 : vector<16x128xf32>
    %cst_17 = arith.constant 0.000000e+00 : f32
    %23 = vector.broadcast %cst_17 : f32 to vector<16x128xf32>
    %24 = arith.maximumf %22, %23 : vector<16x128xf32>
    %25 = arith.truncf %24 : vector<16x128xf32> to vector<16x128xbf16>
    %c0_18 = arith.constant 0 : index
    %c0_19 = arith.constant 0 : index
    %26 = vector.load %arg8[%c0_18, %c0_19] : memref<128x64xbf16, #tpu.memory_space<vmem>>, vector<128x64xbf16>
    %cst_20 = arith.constant dense<0.000000e+00> : vector<16x64xf32>
    %27 = tpu.matmul %25, %26, %cst_20 {dimension_numbers = #tpu.dot_dimension_numbers<[1], [0], [0], [1], [0, 0, 1, 1], [], []>} : vector<16x128xbf16>, vector<128x64xbf16>, vector<16x64xf32> -> vector<16x64xf32>
    %c0_21 = arith.constant 0 : index
    %c0_22 = arith.constant 0 : index
    %28 = vector.load %arg9[%c0_21, %c0_22] : memref<1x64xf32, #tpu.memory_space<vmem>>, vector<1x64xf32>
    %29 = vector.broadcast %28 : vector<1x64xf32> to vector<16x64xf32>
    %30 = arith.addf %27, %29 : vector<16x64xf32>
    %cst_23 = arith.constant 0.000000e+00 : f32
    %31 = vector.broadcast %cst_23 : f32 to vector<16x64xf32>
    %32 = arith.maximumf %30, %31 : vector<16x64xf32>
    %33 = arith.truncf %32 : vector<16x64xf32> to vector<16x64xbf16>
    %c0_24 = arith.constant 0 : index
    %c0_25 = arith.constant 0 : index
    %34 = vector.load %arg10[%c0_24, %c0_25] : memref<64x128xbf16, #tpu.memory_space<vmem>>, vector<64x128xbf16>
    %cst_26 = arith.constant dense<0.000000e+00> : vector<16x128xf32>
    %35 = tpu.matmul %33, %34, %cst_26 {dimension_numbers = #tpu.dot_dimension_numbers<[1], [0], [0], [1], [0, 0, 1, 1], [], []>} : vector<16x64xbf16>, vector<64x128xbf16>, vector<16x128xf32> -> vector<16x128xf32>
    %c0_27 = arith.constant 0 : index
    %c0_28 = arith.constant 0 : index
    %36 = vector.load %arg11[%c0_27, %c0_28] : memref<1x128xf32, #tpu.memory_space<vmem>>, vector<1x128xf32>
    %37 = vector.broadcast %36 : vector<1x128xf32> to vector<16x128xf32>
    %38 = arith.addf %35, %37 : vector<16x128xf32>
    %cst_29 = arith.constant dense<0xFF800000> : vector<16xf32>
    %39 = vector.multi_reduction <maximumf>, %38, %cst_29 [1] : vector<16x128xf32> to vector<16xf32>
    %40 = vector.shape_cast %39 : vector<16xf32> to vector<16x1xf32>
    %41 = vector.broadcast %40 : vector<16x1xf32> to vector<16x128xf32>
    %42 = arith.subf %38, %41 : vector<16x128xf32>
    %43 = math.exp %42 : vector<16x128xf32>
    %cst_30 = arith.constant dense<0.000000e+00> : vector<16xf32>
    %44 = vector.multi_reduction <add>, %43, %cst_30 [1] : vector<16x128xf32> to vector<16xf32>
    %45 = vector.shape_cast %44 : vector<16xf32> to vector<16x1xf32>
    %46 = math.log %45 : vector<16x1xf32>
    %47 = vector.broadcast %46 : vector<16x1xf32> to vector<16x128xf32>
    %48 = arith.subf %42, %47 : vector<16x128xf32>
    %c0_31 = arith.constant 0 : index
    %c0_32 = arith.constant 0 : index
    %49 = vector.load %arg12[%c0_31, %c0_32] : memref<16x128xf32, #tpu.memory_space<vmem>>, vector<16x128xf32>
    tpu.vector_store %arg12[%c0_31, %c0_32], %48 {strides = array<i32>} : memref<16x128xf32, #tpu.memory_space<vmem>>, vector<16x128xf32>,
    return
  }
  func.func @transform_0(%arg0: i32) -> (i32, i32) {
    %c0_i32 = arith.constant 0 : i32
    %c0_i32_0 = arith.constant 0 : i32
    return %arg0, %c0_i32 : i32, i32
  }
  func.func @transform_1(%arg0: i32) -> (i32, i32) {
    %c0_i32 = arith.constant 0 : i32
    %c0_i32_0 = arith.constant 0 : i32
    %c0_i32_1 = arith.constant 0 : i32
    return %c0_i32, %c0_i32_0 : i32, i32
  }
  func.func @transform_2(%arg0: i32) -> (i32, i32) {
    %c0_i32 = arith.constant 0 : i32
    %c0_i32_0 = arith.constant 0 : i32
    %c0_i32_1 = arith.constant 0 : i32
    return %c0_i32, %c0_i32_0 : i32, i32
  }
  func.func @transform_3(%arg0: i32) -> (i32, i32) {
    %c0_i32 = arith.constant 0 : i32
    %c0_i32_0 = arith.constant 0 : i32
    %c0_i32_1 = arith.constant 0 : i32
    return %c0_i32, %c0_i32_0 : i32, i32
  }
  func.func @transform_4(%arg0: i32) -> (i32, i32) {
    %c0_i32 = arith.constant 0 : i32
    %c0_i32_0 = arith.constant 0 : i32
    %c0_i32_1 = arith.constant 0 : i32
    return %c0_i32, %c0_i32_0 : i32, i32
  }
  func.func @transform_5(%arg0: i32) -> (i32, i32) {
    %c0_i32 = arith.constant 0 : i32
    %c0_i32_0 = arith.constant 0 : i32
    %c0_i32_1 = arith.constant 0 : i32
    return %c0_i32, %c0_i32_0 : i32, i32
  }
  func.func @transform_6(%arg0: i32) -> (i32, i32) {
    %c0_i32 = arith.constant 0 : i32
    %c0_i32_0 = arith.constant 0 : i32
    %c0_i32_1 = arith.constant 0 : i32
    return %c0_i32, %c0_i32_0 : i32, i32
  }
  func.func @transform_7(%arg0: i32) -> (i32, i32) {
    %c0_i32 = arith.constant 0 : i32
    %c0_i32_0 = arith.constant 0 : i32
    %c0_i32_1 = arith.constant 0 : i32
    return %c0_i32, %c0_i32_0 : i32, i32
  }
  func.func @transform_8(%arg0: i32) -> (i32, i32) {
    %c0_i32 = arith.constant 0 : i32
    %c0_i32_0 = arith.constant 0 : i32
    %c0_i32_1 = arith.constant 0 : i32
    return %c0_i32, %c0_i32_0 : i32, i32
  }
  func.func @transform_9(%arg0: i32) -> (i32, i32) {
    %c0_i32 = arith.constant 0 : i32
    %c0_i32_0 = arith.constant 0 : i32
    %c0_i32_1 = arith.constant 0 : i32
    return %c0_i32, %c0_i32_0 : i32, i32
  }
  func.func @transform_10(%arg0: i32) -> (i32, i32) {
    %c0_i32 = arith.constant 0 : i32
    %c0_i32_0 = arith.constant 0 : i32
    %c0_i32_1 = arith.constant 0 : i32
    return %c0_i32, %c0_i32_0 : i32, i32
  }
  func.func @transform_11(%arg0: i32) -> (i32, i32) {
    %c0_i32 = arith.constant 0 : i32
    %c0_i32_0 = arith.constant 0 : i32
    return %arg0, %c0_i32 : i32, i32
  }
}

</mosaic_0001>

<bundles_post_ra>
// kernel: custom_rna_model_forward.1
= control target key start
LH: loop header
LB: loop body
LE: loop exit
PB: predicated region body
PF: predicated region fallthrough
CT: control target
= control target key end

     0   :  { %vm62_vm0 = vcmask 261120   ;;  %vm503_vm1 = vcmask 523264   ;;  %s1064_s1 = inlined_call_operand.vmem [shape: bf16[32,128], index: 1, kind: input, shape index: {}]   ;;  %s1065_s0 = inlined_call_operand.vmem [shape: f32[16,32], index: 0, kind: input, shape index: {}]   ;;  %s1066_s3 = inlined_call_operand.vmem [shape: bf16[128,256], index: 3, kind: input, shape index: {}]   ;;  %s1067_s2 = inlined_call_operand.vmem [shape: f32[1,128], index: 2, kind: input, shape index: {}]   ;;  %s1068_s5 = inlined_call_operand.vmem [shape: bf16[256,128], index: 5, kind: input, shape index: {}]   ;;  %s1069_s6 = inlined_call_operand.vmem [shape: f32[1,128], index: 6, kind: input, shape index: {}]   ;;  %s1070_s7 = inlined_call_operand.vmem [shape: bf16[128,64], index: 7, kind: input, shape index: {}]   ;;  %s1071_s4 = inlined_call_operand.vmem [shape: f32[1,256], index: 4, kind: input, shape index: {}]   ;;  %s1072_s8 = inlined_call_operand.vmem [shape: f32[1,64], index: 8, kind: input, shape index: {}]   ;;  %s1073_s9 = inlined_call_operand.vmem [shape: bf16[64,128], index: 9, kind: input, shape index: {}]   ;;  %s1074_s10 = inlined_call_operand.vmem [shape: f32[1,128], index: 10, kind: input, shape index: {}]   ;;  %s1075_s11 = inlined_call_operand.vmem [shape: f32[16,128], index: 11, kind: output, shape index: {}]  }
   0x1   :  { %v734_v0 = vld [vmem:[%s1064_s1 + $0x8] sm:$0xff]  ;;  %v733_v1 = vld [vmem:[%s1064_s1] sm:$0xff]  ;;  %v614_v4 = vld [vmem:[%s1066_s3 + $0x70] sm:$0xf] }
   0x2   :  { %v39_v2 = vld [vmem:[%s1065_s0] sm:$0xff]  ;;  %v40_v3 = vld [vmem:[%s1065_s0 + $0x8] sm:$0xff]  ;;  %v750_v5 = vld [vmem:[%s1066_s3 + $0x74] sm:$0xf0]  ;;  %72 = vmatpush.bf16.msra.mxu0 %v734_v0 }
   0x3   :  { %v615_v6 = vor.u32 %v750_v5, %v614_v4  ;;  %v749_v7 = vld [vmem:[%s1066_s3 + $0x74] sm:$0xf]  ;;  %v616_v8 = vld [vmem:[%s1066_s3 + $0x78] sm:$0xf0]  ;;  %v606_v9 = vld [vmem:[%s1066_s3 + $0x60] sm:$0xf]  ;;  %v41_v15 = vpack.c.bf16 %v40_v3, %v39_v2 }
   0x4   :  { %v619_v10 = vor.u32 %v749_v7, %v616_v8  ;;  %v748_v11 = vld [vmem:[%s1066_s3 + $0x64] sm:$0xf0]  ;;  %v747_v12 = vld [vmem:[%s1066_s3 + $0x64] sm:$0xf]  ;;  %v608_v13 = vld [vmem:[%s1066_s3 + $0x68] sm:$0xf0] }
   0x5   :  { %185 = vmatpush.bf16.msra.mxu1 %v615_v6  ;;  %v607_v14 = vor.u32 %v748_v11, %v606_v9  ;;  %v611_v16 = vor.u32 %v747_v12, %v608_v13  ;;  %v598_v17 = vld [vmem:[%s1066_s3 + $0x50] sm:$0xf]  ;;  %v746_v18 = vld [vmem:[%s1066_s3 + $0x54] sm:$0xf0]  ;;  %v745_v19 = vld [vmem:[%s1066_s3 + $0x54] sm:$0xf] }
   0x6   :  { %199 = vmatpush.bf16.msra.mxu2 %v619_v10  ;;  %73 = vmatpush.bf16.msra.mxu0 %v733_v1  ;;  %v600_v20 = vld [vmem:[%s1066_s3 + $0x58] sm:$0xf0]  ;;  %v599_v21 = vor.u32 %v746_v18, %v598_v17  ;;  %v590_v23 = vld [vmem:[%s1066_s3 + $0x40] sm:$0xf]  ;;  %v744_v24 = vld [vmem:[%s1066_s3 + $0x44] sm:$0xf0] }
   0x7   :  { %v603_v22 = vor.u32 %v745_v19, %v600_v20  ;;  %v743_v25 = vld [vmem:[%s1066_s3 + $0x44] sm:$0xf]  ;;  %v592_v26 = vld [vmem:[%s1066_s3 + $0x48] sm:$0xf0]  ;;  %v591_v27 = vor.u32 %v744_v24, %v590_v23  ;;  %v582_v29 = vld [vmem:[%s1066_s3 + $0x30] sm:$0xf] }
   0x8   :  { %v595_v28 = vor.u32 %v743_v25, %v592_v26  ;;  %v742_v30 = vld [vmem:[%s1066_s3 + $0x34] sm:$0xf0]  ;;  %v741_v31 = vld [vmem:[%s1066_s3 + $0x34] sm:$0xf]  ;;  %v584_v33 = vld [vmem:[%s1066_s3 + $0x38] sm:$0xf0] }
   0x9   :  { %186 = vmatpush.bf16.msra.mxu1 %v607_v14  ;;  %555 = vmatmul.msk.bf16.vlgmr.msra.gmra.mxu0 %vm62_vm0, %v41_v15  ;;  %v583_v32 = vor.u32 %v742_v30, %v582_v29  ;;  %v587_v34 = vor.u32 %v741_v31, %v584_v33  ;;  %v574_v35 = vld [vmem:[%s1066_s3 + $0x20] sm:$0xf]  ;;  %v740_v36 = vld [vmem:[%s1066_s3 + $0x24] sm:$0xf0]  ;;  %v739_v37 = vld [vmem:[%s1066_s3 + $0x24] sm:$0xf] }
   0xa   :  { %200 = vmatpush.bf16.msra.mxu2 %v611_v16  ;;  %v575_v38 = vor.u32 %v740_v36, %v574_v35  ;;  %v576_v39 = vld [vmem:[%s1066_s3 + $0x28] sm:$0xf0]  ;;  %v566_v41 = vld [vmem:[%s1066_s3 + $0x10] sm:$0xf]  ;;  %v738_v42 = vld [vmem:[%s1066_s3 + $0x14] sm:$0xf0] }
   0xb   :  { %v579_v40 = vor.u32 %v739_v37, %v576_v39  ;;  %v737_v43 = vld [vmem:[%s1066_s3 + $0x14] sm:$0xf]  ;;  %v567_v44 = vor.u32 %v738_v42, %v566_v41  ;;  %v568_v45 = vld [vmem:[%s1066_s3 + $0x18] sm:$0xf0]  ;;  %v558_v47 = vld [vmem:[%s1066_s3] sm:$0xf] }
   0xc   :  { %v571_v46 = vor.u32 %v737_v43, %v568_v45  ;;  %v736_v48 = vld [vmem:[%s1066_s3 + $0x4] sm:$0xf0]  ;;  %v735_v49 = vld [vmem:[%s1066_s3 + $0x4] sm:$0xf]  ;;  %v560_v51 = vld [vmem:[%s1066_s3 + $0x8] sm:$0xf0] }
   0xd   :  { %187 = vmatpush.bf16.msra.mxu1 %v599_v21  ;;  %v559_v50 = vor.u32 %v736_v48, %v558_v47  ;;  %v563_v52 = vor.u32 %v735_v49, %v560_v51  ;;  %v758_v53 = vld [vmem:[%s1068_s5 + $0x38] sm:$0xff]  ;;  %v757_v55 = vld [vmem:[%s1068_s5 + $0x30] sm:$0xff]  ;;  %v756_v57 = vld [vmem:[%s1068_s5 + $0x28] sm:$0xff] }
   0xe   :  { %201 = vmatpush.bf16.msra.mxu2 %v603_v22  ;;  %v766_v54 = vld [vmem:[%s1068_s5 + $0x78] sm:$0xff]  ;;  %351 = vmatpush.bf16.msra.mxu3 %v758_v53  ;;  %v765_v56 = vld [vmem:[%s1068_s5 + $0x70] sm:$0xff]  ;;  %v764_v58 = vld [vmem:[%s1068_s5 + $0x68] sm:$0xff] }
   0xf   :  { %365 = vmatpush.bf16.msrb.mxu0 %v766_v54  ;;  %v755_v59 = vld [vmem:[%s1068_s5 + $0x20] sm:$0xff]  ;;  %v754_v4 = vld [vmem:[%s1068_s5 + $0x18] sm:$0xff]  ;;  %v753_v6 = vld [vmem:[%s1068_s5 + $0x10] sm:$0xff] }
  0x10   :  { %v779_v61 = vld [vmem:[%s1067_s2] ss:$0 sm:$0xff]  ;;  %v762_v7 = vld [vmem:[%s1068_s5 + $0x58] sm:$0xff]  ;;  %v752_v8 = vld [vmem:[%s1068_s5 + $0x8] sm:$0xff] }
  0x11   :  { %188 = vmatpush.bf16.msra.mxu1 %v591_v27  ;;  %v763_v5 = vld [vmem:[%s1068_s5 + $0x60] sm:$0xff]  ;;  %v761_v9 = vld [vmem:[%s1068_s5 + $0x50] sm:$0xff]  ;;  %v760_v11 = vld [vmem:[%s1068_s5 + $0x48] sm:$0xff] }
  0x12   :  { %202 = vmatpush.bf16.msra.mxu2 %v595_v28  ;;  %352 = vmatpush.bf16.msra.mxu3 %v757_v55  ;;  %v751_v10 = vld [vmem:[%s1068_s5] sm:$0xff]  ;;  %v774_v13 = vld [vmem:[%s1070_s7 + $0x38] sm:$0xff]  ;;  %v773_v14 = vld [vmem:[%s1070_s7 + $0x30] sm:$0xff] }
  0x13   :  { %366 = vmatpush.bf16.msrb.mxu0 %v765_v56  ;;  %v759_v12 = vld [vmem:[%s1068_s5 + $0x40] sm:$0xff]  ;;  %v772_v15 = vld [vmem:[%s1070_s7 + $0x28] sm:$0xff]  ;;  %v769_v35 = vld [vmem:[%s1070_s7 + $0x10] sm:$0xff] }
  0x14   :  { %v771_v16 = vld [vmem:[%s1070_s7 + $0x20] sm:$0xff]  ;;  %v768_v36 = vld [vmem:[%s1070_s7 + $0x8] sm:$0xff]  ;;  %v777_v51 = vld [vmem:[%s1073_s9 + $0x10] sm:$0xff] }
  0x15   :  { %189 = vmatpush.bf16.msra.mxu1 %v583_v32  ;;  %v99_v17 = vld [vmem:[%s1071_s4] sm:$0x3] }
  0x16   :  { %203 = vmatpush.bf16.msra.mxu2 %v587_v34  ;;  %353 = vmatpush.bf16.msra.mxu3 %v756_v57  ;;  %v101_v19 = vperm.slane %v99_v17, 0  ;;  %v102_v23 = vperm.slane %v99_v17, 1  ;;  %v770_v34 = vld [vmem:[%s1070_s7 + $0x18] sm:$0xff]  ;;  %v767_v37 = vld [vmem:[%s1070_s7] sm:$0xff] }
  0x17   :  { %367 = vmatpush.bf16.msrb.mxu0 %v764_v58  ;;  %v780_v41 = vld [vmem:[%s1069_s6] ss:$0 sm:$0xff] }
  0x18   :  { %v775_v53 = vld [vmem:[%s1073_s9] sm:$0xff] }
  0x19   :  { %190 = vmatpush.bf16.msra.mxu1 %v575_v38  ;;  %v778_v38 = vld [vmem:[%s1073_s9 + $0x18] sm:$0xff]  ;;  %v781_v55 = vld [vmem:[%s1072_s8] ss:$0 sm:$0xff] }
  0x1a   :  { %204 = vmatpush.bf16.msra.mxu2 %v579_v40  ;;  %354 = vmatpush.bf16.msra.mxu3 %v755_v59 }
  0x1b   :  { %368 = vmatpush.bf16.msrb.mxu0 %v763_v5 }
  0x1d   :  { %191 = vmatpush.bf16.msra.mxu1 %v567_v44 }
  0x1e   :  { %205 = vmatpush.bf16.msra.mxu2 %v571_v46  ;;  %355 = vmatpush.bf16.msra.mxu3 %v754_v4 }
  0x1f   :  { %369 = vmatpush.bf16.msrb.mxu0 %v762_v7 }
  0x21   :  { %192 = vmatpush.bf16.msra.mxu1 %v559_v50 }
  0x22   :  { %206 = vmatpush.bf16.msra.mxu2 %v563_v52  ;;  %356 = vmatpush.bf16.msra.mxu3 %v753_v6  ;;  %v776_v52 = vld [vmem:[%s1073_s9 + $0x8] sm:$0xff] }
  0x23   :  { %370 = vmatpush.bf16.msrb.mxu0 %v761_v9 }
  0x25   :  { %450 = vmatpush.bf16.msrb.mxu1 %v774_v13 }
  0x26   :  { %357 = vmatpush.bf16.msra.mxu3 %v752_v8  ;;  %511 = vmatpush.bf16.msrb.mxu2 %v778_v38 }
  0x27   :  { %371 = vmatpush.bf16.msrb.mxu0 %v760_v11 }
  0x29   :  { %451 = vmatpush.bf16.msrb.mxu1 %v773_v14 }
  0x2a   :  { %358 = vmatpush.bf16.msra.mxu3 %v751_v10  ;;  %512 = vmatpush.bf16.msrb.mxu2 %v777_v51 }
  0x2b   :  { %372 = vmatpush.bf16.msrb.mxu0 %v759_v12 }
  0x2d   :  { %452 = vmatpush.bf16.msrb.mxu1 %v772_v15 }
  0x2e   :  { %513 = vmatpush.bf16.msrb.mxu2 %v776_v52 }
  0x31   :  { %453 = vmatpush.bf16.msrb.mxu1 %v771_v16 }
  0x32   :  { %514 = vmatpush.bf16.msrb.mxu2 %v775_v53 }
  0x35   :  { %454 = vmatpush.bf16.msrb.mxu1 %v770_v34 }
  0x39   :  { %455 = vmatpush.bf16.msrb.mxu1 %v769_v35 }
  0x3d   :  { %456 = vmatpush.bf16.msrb.mxu1 %v768_v36 }
  0x41   :  { %457 = vmatpush.bf16.msrb.mxu1 %v767_v37 }
  0x86   :  { %v75_v60 = vpop.f32.mrf.mxu0 }
  0x87   :  { %v76_v62 = vadd.f32 %v779_v61, %v75_v60 }
  0x89   :  { %v80_v1 = vmax.f32 %v76_v62, 0.0  ;;  %v782_v62 = vld [vmem:[%s1074_s10] ss:$0 sm:$0xff] }
  0x8e   :  { %v77_v63 = vpop.f32.mrf.mxu0 }
  0x8f   :  { %v78_v0 = vadd.f32 %v779_v61, %v77_v63 }
  0x91   :  { %v81_v2 = vmax.f32 %v78_v0, 0.0 }
  0x93   :  { %v82_v3 = vpack.c.bf16 %v81_v2, %v80_v1 }
  0x95   :  { %193 = vmatmul.bf16.vlgmr.msra.gmra.mxu1 %v82_v3  ;;  %207 = vmatmul.bf16.vlgmr.msra.gmra.mxu2 %v82_v3 }
 0x112   :  { %v194_v18 = vpop.f32.mrf.mxu1 }
 0x113   :  { %v195_v21 = vadd.f32 %v194_v18, %v101_v19 }
 0x115   :  { %v213_v25 = vmax.f32 %v195_v21, 0.0 }
 0x118   :  { %v208_v20 = vpop.f32.mrf.mxu2 }
 0x119   :  { %v209_v27 = vadd.f32 %v208_v20, %v102_v23 }
 0x11a   :  { %v196_v22 = vpop.f32.mrf.mxu1 }
 0x11b   :  { %v197_v24 = vadd.f32 %v196_v22, %v101_v19  ;;  %v214_v31 = vmax.f32 %v209_v27, 0.0 }
 0x11d   :  { %v215_v26 = vmax.f32 %v197_v24, 0.0 }
 0x11f   :  { %v217_v28 = vpack.c.bf16 %v215_v26, %v213_v25 }
 0x120   :  { %v210_v29 = vpop.f32.mrf.mxu2 }
 0x121   :  { %v211_v30 = vadd.f32 %v210_v29, %v102_v23  ;;  %359 = vmatmul.bf16.vlgmr.msra.gmra.mxu3 %v217_v28 }
 0x123   :  { %v216_v32 = vmax.f32 %v211_v30, 0.0 }
 0x125   :  { %v218_v33 = vpack.c.bf16 %v216_v32, %v214_v31 }
 0x127   :  { %373 = vmatmul.bf16.vlgmr.msrb.gmra.mxu0 %v218_v33 }
 0x1a4   :  { %v360_v39 = vpop.f32.mrf.mxu3  ;;  %v374_v40 = vpop.f32.mrf.mxu0 }
 0x1a5   :  { %v361_v42 = vadd.f32 %v780_v41, %v360_v39 }
 0x1a7   :  { %v375_v44 = vadd.f32 %v374_v40, %v361_v42 }
 0x1a9   :  { %v379_v48 = vmax.f32 %v375_v44, 0.0 }
 0x1ac   :  { %v362_v43 = vpop.f32.mrf.mxu3  ;;  %v376_v46 = vpop.f32.mrf.mxu0 }
 0x1ad   :  { %v363_v45 = vadd.f32 %v780_v41, %v362_v43 }
 0x1af   :  { %v377_v47 = vadd.f32 %v376_v46, %v363_v45 }
 0x1b1   :  { %v380_v49 = vmax.f32 %v377_v47, 0.0 }
 0x1b3   :  { %v381_v50 = vpack.c.bf16 %v380_v49, %v379_v48 }
 0x1b5   :  { %458 = vmatmul.bf16.vlgmr.msrb.gmra.mxu1 %v381_v50 }
 0x232   :  { %v459_v54 = vpop.f32.mrf.mxu1 }
 0x233   :  { %v460_v56 = vadd.f32 %v781_v55, %v459_v54 }
 0x235   :  { %v464_v59 = vmax.f32 %v460_v56, 0.0 }
 0x23a   :  { %v461_v57 = vpop.f32.mrf.mxu1 }
 0x23b   :  { %v462_v58 = vadd.f32 %v781_v55, %v461_v57 }
 0x23d   :  { %v465_v60 = vmax.f32 %v462_v58, 0.0 }
 0x23f   :  { %v466_v61 = vpack.c.bf16 %v465_v60, %v464_v59 }
 0x241   :  { %732 = vmatmul.msk.bf16.vlgmr.msrb.gmra.mxu2 %vm503_vm1, %v466_v61 }
 0x2c4   :  { %v516_v63 = vpop.f32.mrf.mxu2 }
 0x2c5   :  { %v517_v0 = vadd.f32 %v782_v62, %v516_v63 }
 0x2c7   :  { %521 = vmax.xlane.f32.xlu0 %v517_v0 }
 0x2cc   :  { %v518_v1 = vpop.f32.mrf.mxu2 }
 0x2cd   :  { %v519_v2 = vadd.f32 %v782_v62, %v518_v1 }
 0x2cf   :  { %523 = vmax.xlane.f32.xlu0 %v519_v2 }
 0x33a   :  { %v522_v3 = vpop.xlane.xlu0 %521 }
 0x33b   :  { %v525_v4 = vsub.f32 %v517_v0, %v522_v3 }
 0x33d   :  { %v527_v5 = vmul.f32 1.442695, %v525_v4 }
 0x33f   :  { %783 = vpow2.f32 %v527_v5 }
 0x342   :  { %v524_v6 = vpop.xlane.xlu0 %523 }
 0x343   :  { %v526_v7 = vsub.f32 %v519_v2, %v524_v6 }
 0x345   :  { %v784_v8 = vpop.eup %783  ;;  %v529_v9 = vmul.f32 1.442695, %v526_v7 }
 0x346   :  { %531 = vadd.xlane.f32.xlu1 %v784_v8 }
 0x347   :  { %785 = vpow2.f32 %v529_v9 }
 0x34d   :  { %v786_v10 = vpop.eup %785 }
 0x34e   :  { %533 = vadd.xlane.f32.xlu1 %v786_v10 }
 0x3b9   :  { %v532_v11 = vpop.xlane.xlu1 %531 }
 0x3ba   :  { %787 = vlog2.f32 %v532_v11 }
 0x3c0   :  { %v788_v12 = vpop.eup %787 }
 0x3c1   :  { %v536_v13 = vmul.f32 0.6931472, %v788_v12  ;;  %v534_v14 = vpop.xlane.xlu1 %533 }
 0x3c2   :  { %789 = vlog2.f32 %v534_v14 }
 0x3c3   :  { %v539_v15 = vsub.f32 %v525_v4, %v536_v13 }
 0x3c5   :  { %541 = vst [vmem:[%s1075_s11] sm:$0xff] %v539_v15 }
 0x3c8   :  { %v790_v16 = vpop.eup %789 }
 0x3c9   :  { %v538_v17 = vmul.f32 0.6931472, %v790_v16 }
 0x3cb   :  { %v540_v18 = vsub.f32 %v526_v7, %v538_v17 }
 0x3cd   :  { %542 = vst [vmem:[%s1075_s11 + $0x8] sm:$0xff] %v540_v18 }

</bundles_post_ra>
